<compile_context>
chip_gen: v7x
topology: tpu7x:2x2x1
jax: 0.10.0
libtpu: 0.0.40
codegen_flags: <defaults>
</compile_context>

<pallas_src>
import functools

import jax
import jax.numpy as jnp
from jax.experimental import pallas as pl
from jax.experimental.pallas import tpu as pltpu


def _round_up(v, m):
    return (v + m - 1) // m * m


def _vmem_capacity_bytes():
    try:
        return int(pltpu.get_tpu_info().vmem_capacity_bytes)
    except Exception:
        return 64 * 1024 * 1024  # conservative fallback (v7x per-core VMEM)


def _value_embedding_kernel(x_ref, w_ref, b_ref, o_ref, *, d_block, w_resident,
                            precision):
    # x_ref : (1, T, 3C)   im2col block (circular taps pre-concatenated)
    # w_ref : (3C, Dp)     resident fused weight  |  (3C, d_block) tile
    # b_ref : (1, Dp)      resident bias          |  (1, d_block) tile
    # o_ref : (1, T, d_block)
    if w_resident:
        # d_block is a multiple of 128 on this path -> 128-aligned lane slice.
        off = pl.multiple_of(pl.program_id(1) * d_block, d_block)
        w = w_ref[:, pl.ds(off, d_block)]
        b = b_ref[:, pl.ds(off, d_block)]
    else:
        w = w_ref[...]
        b = b_ref[...]
    acc = jnp.dot(x_ref[0], w, preferred_element_type=jnp.float32,
                  precision=precision)
    acc = acc + b                      # (1, d_block) broadcasts over T (f32)
    o_ref[0] = acc.astype(o_ref.dtype)


def value_embedding(x, weight, bias, *, d_block=None, compute_dtype=None,
                    out_dtype=None, precision=None):
    """x: (B, T, C); weight: (D, C, 3) (PyTorch Conv1d layout); bias: (D,).
    Returns (B, T, D) == Conv1d(C, D, k=3, padding=1, padding_mode='circular')."""
    B, T, C = x.shape
    D = weight.shape[0]
    assert weight.shape == (D, C, 3) and bias.shape == (D,)
    out_dtype = x.dtype if out_dtype is None else out_dtype

    # im2col: column k*C + c of x3 holds channel c of x[t - 1 + k] (circular).
    x3 = jnp.concatenate(
        [jnp.roll(x, 1, axis=1), x, jnp.roll(x, -1, axis=1)], axis=-1)
    # fused weight: row k*C + c multiplies x3 column k*C + c.
    w_fused = jnp.transpose(weight, (2, 1, 0)).reshape(3 * C, D)
    bias2d = bias.reshape(1, D).astype(jnp.float32)

    if compute_dtype is not None:       # e.g. jnp.bfloat16: halves HBM reads
        x3 = x3.astype(compute_dtype)
        w_fused = w_fused.astype(compute_dtype)

    x_item = jnp.dtype(x3.dtype).itemsize
    w_item = jnp.dtype(w_fused.dtype).itemsize
    o_item = jnp.dtype(out_dtype).itemsize

    cap = _vmem_capacity_bytes()
    # f32 bytes of one (T, d_block) output/accumulator block we will hold.
    blk_budget = min(8 << 20, max(1 << 20, cap // 16))

    if d_block is None:
        if D % 128 == 0:
            d_block = 128
            for cand in (1024, 512, 256):        # prefer >=256 (v6e/v7x MXU)
                if D % cand == 0 and _round_up(T, 8) * cand * 4 <= blk_budget:
                    d_block = cand
                    break
        elif _round_up(T, 8) * _round_up(D, 128) * 4 <= 2 * blk_budget:
            d_block = D    # one full-D tile: masked vst on lane remainder only
        else:
            d_block = 128
            for cand in (1024, 512, 256):
                if _round_up(T, 8) * cand * 4 <= blk_budget:
                    d_block = cand
                    break
    assert d_block == D or d_block % 128 == 0, "d_block must be D or 128-mult"
    n_d = pl.cdiv(D, d_block)
    Dp = n_d * d_block
    if Dp != D:
        # Rare path (large D not a multiple of 128): pad the tiny weight/bias;
        # the final partial output tile is masked by Pallas -- the (B, T, D)
        # output itself is never padded or re-sliced in HBM.
        w_fused = jnp.pad(w_fused, ((0, 0), (0, Dp - D)))
        bias2d = jnp.pad(bias2d, ((0, 0), (0, Dp - D)))

    # Keep the fused weight resident in VMEM (fetched once) unless it is big.
    w_res_bytes = 2 * _round_up(3 * C, 8) * _round_up(Dp, 128) * w_item
    w_resident = (w_res_bytes <= cap // 8) and n_d > 1

    if w_resident:
        grid = (B, n_d)
        x_spec = pl.BlockSpec((1, T, 3 * C), lambda b, j: (b, 0, 0))
        w_spec = pl.BlockSpec((3 * C, Dp), lambda b, j: (0, 0))      # resident
        b_spec = pl.BlockSpec((1, Dp), lambda b, j: (0, 0))          # resident
        o_spec = pl.BlockSpec((1, T, d_block), lambda b, j: (b, 0, j))
    elif n_d > 1 and _round_up(T, 8) * x_item <= d_block * w_item:
        # Weight tiles outweigh x blocks: keep the weight index constant over
        # the inner axis (whole weight read once total), re-fetch x per step.
        grid = (n_d, B)
        x_spec = pl.BlockSpec((1, T, 3 * C), lambda j, b: (b, 0, 0))
        w_spec = pl.BlockSpec((3 * C, d_block), lambda j, b: (0, j))
        b_spec = pl.BlockSpec((1, d_block), lambda j, b: (0, j))
        o_spec = pl.BlockSpec((1, T, d_block), lambda j, b: (b, 0, j))
    else:
        grid = (B, n_d)
        x_spec = pl.BlockSpec((1, T, 3 * C), lambda b, j: (b, 0, 0))
        w_spec = pl.BlockSpec((3 * C, d_block), lambda b, j: (0, j))
        b_spec = pl.BlockSpec((1, d_block), lambda b, j: (0, j))
        o_spec = pl.BlockSpec((1, T, d_block), lambda b, j: (b, 0, j))

    # VMEM working set (double-buffered blocks + f32 accumulator) with headroom.
    w_cols = Dp if w_resident else d_block
    est = (2 * _round_up(T, 8) * _round_up(3 * C, 128) * x_item          # x3
           + 2 * _round_up(3 * C, 8) * _round_up(w_cols, 128) * w_item   # w
           + 2 * 8 * _round_up(w_cols, 128) * 4                          # bias
           + 2 * _round_up(T, 8) * _round_up(d_block, 128) * o_item      # out
           + _round_up(T, 8) * _round_up(d_block, 128) * 4)              # acc
    vmem_limit = int(min(cap, max(32 << 20, 2 * est + (4 << 20))))

    kernel = functools.partial(_value_embedding_kernel, d_block=d_block,
                               w_resident=w_resident, precision=precision)
    return pl.pallas_call(
        kernel,
        out_shape=jax.ShapeDtypeStruct((B, T, D), out_dtype),
        grid_spec=pltpu.PrefetchScalarGridSpec(
            num_scalar_prefetch=0,
            grid=grid,
            in_specs=[x_spec, w_spec, b_spec],
            out_specs=o_spec,
        ),
        compiler_params=pltpu.CompilerParams(
            dimension_semantics=("parallel", "parallel"),
            vmem_limit_bytes=vmem_limit),
    )(x3, w_fused, bias2d)


def _reference(x, weight, bias):
    """Exact f32 reference (elementwise multiply + sum, no MXU) matching
    nn.Conv1d(c_in, d_model, 3, padding=1, padding_mode='circular')."""
    def tap(xk, k):
        return (xk[:, :, None, :] * weight[None, None, :, :, k]).sum(-1)
    x_prev = jnp.roll(x, 1, axis=1)
    x_next = jnp.roll(x, -1, axis=1)
    return tap(x_prev, 0) + tap(x, 1) + tap(x_next, 2) + bias[None, None, :]


if __name__ == "__main__":
    B, T, C, D = 2, 8, 4, 32
    key = jax.random.PRNGKey(0)
    kx, kw, kb = jax.random.split(key, 3)

    # bf16-representable f32 values so the check is tight regardless of the
    # MXU's default contraction precision (products exact, f32 accumulation).
    x = jax.random.normal(kx, (B, T, C), jnp.float32)
    x = x.astype(jnp.bfloat16).astype(jnp.float32)
    fan_in = C * 3
    bound = 1.0 / (fan_in ** 0.5)
    weight = jax.random.uniform(kw, (D, C, 3), jnp.float32, -bound, bound)
    weight = weight.astype(jnp.bfloat16).astype(jnp.float32)
    bias = jax.random.uniform(kb, (D,), jnp.float32, -bound, bound)

    out = jax.block_until_ready(value_embedding(x, weight, bias))
    ref = _reference(x, weight, bias)

    assert out.shape == (B, T, D)
    assert jnp.allclose(out, ref, atol=1e-5, rtol=1e-5), "mismatch vs reference"

    print("KERNEL_OK")
</pallas_src>

<mosaic_0001>
module attributes {stable_mosaic.version = 11 : i64} {
  func.func @_value_embedding_kernel(%arg0: i32, %arg1: i32, %arg2: memref<1x8x12xf32, #tpu.memory_space<vmem>>, %arg3: memref<12x32xf32, #tpu.memory_space<vmem>>, %arg4: memref<1x32xf32, #tpu.memory_space<vmem>>, %arg5: memref<1x8x32xf32, #tpu.memory_space<vmem>>) attributes {dimension_semantics = [#tpu.dimension_semantics<parallel>, #tpu.dimension_semantics<parallel>], iteration_bounds = array<i64: 2, 1>, scalar_prefetch = 0 : i64, scratch_operands = 0 : i64, tpu.core_type = #tpu.core_type<tc>, window_params = [{transform_indices = @transform_0, window_bounds = array<i64: 1, 8, 12>}, {transform_indices = @transform_1, window_bounds = array<i64: 12, 32>}, {transform_indices = @transform_2, window_bounds = array<i64: 1, 32>}, {transform_indices = @transform_3, window_bounds = array<i64: 1, 8, 32>}]} {
    %c0 = arith.constant 0 : index
    %c0_0 = arith.constant 0 : index
    %0 = vector.load %arg3[%c0, %c0_0] : memref<12x32xf32, #tpu.memory_space<vmem>>, vector<12x32xf32>
    %c0_1 = arith.constant 0 : index
    %c0_2 = arith.constant 0 : index
    %1 = vector.load %arg4[%c0_1, %c0_2] : memref<1x32xf32, #tpu.memory_space<vmem>>, vector<1x32xf32>
    %c0_3 = arith.constant 0 : index
    %c0_4 = arith.constant 0 : index
    %c0_5 = arith.constant 0 : index
    %2 = vector.load %arg2[%c0_3, %c0_4, %c0_5] : memref<1x8x12xf32, #tpu.memory_space<vmem>>, vector<1x8x12xf32>
    %3 = vector.shape_cast %2 : vector<1x8x12xf32> to vector<8x12xf32>
    %cst = arith.constant dense<0.000000e+00> : vector<8x32xf32>
    %4 = tpu.matmul %3, %0, %cst {dimension_numbers = #tpu.dot_dimension_numbers<[1], [0], [0], [1], [0, 0, 1, 1], [], []>} : vector<8x12xf32>, vector<12x32xf32>, vector<8x32xf32> -> vector<8x32xf32>
    %5 = vector.broadcast %1 : vector<1x32xf32> to vector<8x32xf32>
    %6 = arith.addf %4, %5 : vector<8x32xf32>
    %c0_6 = arith.constant 0 : index
    %c0_7 = arith.constant 0 : index
    %c0_8 = arith.constant 0 : index
    %7 = vector.load %arg5[%c0_6, %c0_7, %c0_8] : memref<1x8x32xf32, #tpu.memory_space<vmem>>, vector<1x8x32xf32>
    %8 = vector.shape_cast %7 : vector<1x8x32xf32> to vector<8x32xf32>
    %9 = vector.shape_cast %6 : vector<8x32xf32> to vector<1x8x32xf32>
    tpu.vector_store %arg5[%c0_6, %c0_7, %c0_8], %9 {strides = array<i32>} : memref<1x8x32xf32, #tpu.memory_space<vmem>>, vector<1x8x32xf32>,
    return
  }
  func.func @transform_0(%arg0: i32, %arg1: i32) -> (i32, i32, i32) {
    %c0_i32 = arith.constant 0 : i32
    %c0_i32_0 = arith.constant 0 : i32
    %c0_i32_1 = arith.constant 0 : i32
    return %arg0, %c0_i32, %c0_i32_0 : i32, i32, i32
  }
  func.func @transform_1(%arg0: i32, %arg1: i32) -> (i32, i32) {
    %c0_i32 = arith.constant 0 : i32
    %c0_i32_0 = arith.constant 0 : i32
    return %c0_i32, %arg1 : i32, i32
  }
  func.func @transform_2(%arg0: i32, %arg1: i32) -> (i32, i32) {
    %c0_i32 = arith.constant 0 : i32
    %c0_i32_0 = arith.constant 0 : i32
    return %c0_i32, %arg1 : i32, i32
  }
  func.func @transform_3(%arg0: i32, %arg1: i32) -> (i32, i32, i32) {
    %c0_i32 = arith.constant 0 : i32
    %c0_i32_0 = arith.constant 0 : i32
    return %arg0, %c0_i32, %arg1 : i32, i32, i32
  }
}

</mosaic_0001>

<bundles_post_ra>
// kernel: tpu_custom_call.1
= control target key start
LH: loop header
LB: loop body
LE: loop exit
PB: predicated region body
PF: predicated region fallthrough
CT: control target
= control target key end

     0   :  { %8 = vsyncpa [#allocation3], 0  ;;  %s948_s0 = inlined_call_operand.hbm [shape: f32[2,8,12], index: 0, kind: input, shape index: {}]   ;;  %s949_s1 = inlined_call_operand.hbm [shape: f32[12,32], index: 1, kind: input, shape index: {}]   ;;  %s950_s2 = inlined_call_operand.vmem [shape: f32[1,32], index: 2, kind: input, shape index: {}]   ;;  %s951_s3 = inlined_call_operand.hbm [shape: f32[2,8,32], index: 3, kind: output, shape index: {}]  }
   0x1   :  { %10 = vsyncpa [#allocation3 + $0x1], 0 }
   0x2   :  { %11 = vsyncpa [#allocation6], 0 }
   0x3   :  { %12 = vsyncpa [#allocation4], 0 }
   0x4   :  { %14 = vsyncpa [#allocation4 + $0x1], 0  ;;  %s731_s12 = smov 0   ;;  %s733_s13 = smov 0  }
   0x5   :  { %s735_s14 = smov 0   ;;  %s737_s15 = smov 0  }
   0x6   :  { %s739_s16 = smov 0   ;;  %s741_s17 = smov 0  }
   0x7 LB: > { %s444_s18 = sadd.s32 4294967295, %s700_s17   ;;  %s445_s19 = sadd.s32 4294967294, %s700_s17   ;;  %s700_s17 = sphi %s741_s17, %s20_s17   ;;  %s696_s16 = sphi %s739_s16, %s975_s16   ;;  %s692_s15 = sphi %s737_s15, %s974_s15   ;;  %s688_s14 = sphi %s735_s14, %s973_s14   ;;  %s684_s13 = sphi %s733_s13, %s972_s13   ;;  %s680_s12 = sphi %s731_s12, %s971_s12  }
   0x8   : > { %p52_p0 = scmp.ne.s32.totalorder %s684_s13, %s680_s12  ;;  %p765_p1 = scmp.eq.s32.totalorder %s444_s18, 0 }
   0x9   : > { %p769_p2 = scmp.eq.s32.totalorder %s444_s18, 1  ;;  %p136_p3 = scmp.eq.s32.totalorder %s445_s19, 1 }
   0xa   : > { %s956_s20 = scalar_select %p765_p1, 1, 0 }
   0xb   : > { %s957_s21 = scalar_select %p769_p2, 1, 0 }
   0xc   : > { %p775_p4 = por %p765_p1, %p52_p0  ;;  %p446_p5 = scmp.ge.s32.totalorder %s700_s17, 1 }
   0xd   : > { %p780_p6 = por %p136_p3, %p52_p0  ;;  %p143_p7 = scmp.lt.s32.totalorder %s700_s17, 3 }
   0xe   : > { %s958_s22 = scalar_select %p775_p4, 1, 0 }
   0xf   : > { %s959_s23 = scalar_select %p780_p6, 1, 0 }
  0x10   : > { %p785_p8 = pnand %p446_p5, %p143_p7  ;;  %s702_s25 = smov [#allocation5]  }
  0x11   : > { %s157_s26 = sshll.u32 %s702_s25, 4  ;;  %s32_s28 = sadd.s32 1, %s696_s16  ;;  %s158_s26 = int_to_ptr.vmem [resolvable:$true] %s157_s26 }
  0x12   : > { %s960_s24 = scalar_select %p785_p8, 1, 0 }
  0x13   : > { %p485_p9 = pneg %p785_p8  ;;  %s556_s4 = scalar_lea.hbm %s949_s1, 256 }
  0x14   : > { %p557_p12 = scmp.ne.s32.totalorder %s949_s1, %s556_s4  ;;  %p563_p5 = scmp.lt.u32.totalorder %s556_s4, %s949_s1 }
  0x15   : > { %p794_p11 = pnand %p485_p9, %p765_p1 }
  0x17   : > { %p558_p13 = pneg %p794_p11 }
  0x19   : > { %p559_p0 = pnand %p558_p13, %p557_p12 }
  0x1b   : > { %p560_p3 = pneg %p559_p0 }
  0x1d   : > { %p565_p7 = pnand %p563_p5, %p560_p3 }
  0x1f   : > { %568 = shalt.err (!%p565_p7)
}
  0x20   : > { %s569_s9 = scalar_lea.vmem %s158_s26, 256  ;;  %p577_p1 = scmp.lt.s32.totalorder %s158_s26, %s158_s26 }
  0x21   : > { %p570_p9 = scmp.ne.s32.totalorder %s158_s26, %s569_s9  ;;  %p578_p4 = scmp.lt.s32.totalorder %s569_s9, %s569_s9 }
  0x23   : > { %p572_p10 = pnand %p570_p9, %p558_p13  ;;  %p579_p8 = por %p578_p4, %p577_p1 }
  0x25   : > { %p573_p6 = pneg %p572_p10 }
  0x27   : > { %p580_p2 = pnand %p579_p8, %p573_p6 }
  0x29   : > { %583 = shalt.err (!%p580_p2)
}
  0x2a   : > { %s703_s10 = smov 128   ;;  %s704_s11 = smov 8  }
  0x2b   : > { %488 = dma.hbm_to_vmem [thread:$0]  (!%p794_p11), %s949_s1, 256, %s158_s26, [#allocation6], %s703_s10, %s703_s10, %s704_s11  }
  0x2c   : > { %p34_p1 = scmp.ge.s32.totalorder %s32_s28, 2  ;;  %s39_s25 = sadd.s32 1, %s688_s14 }
  0x2d   : > { %p46_p2 = scmp.ne.s32.totalorder %s688_s14, %s684_s13  ;;  %p47_p4 = scmp.eq.s32.totalorder %s700_s17, 0 }
  0x2e   : > { %s977_s28 = smov (%p34_p1, %s32_s28), 0  ;;  %p963_p8 = scmp.ne.s32.totalorder %s957_s21, 0 }
  0x2f   : > { %p821_p6 = por %p47_p4, %p46_p2  ;;  %s36_s27 = ssub.s32 %s696_s16, %s977_s28 }
  0x30   : > { %p827_p10 = por %p963_p8, %p46_p2  ;;  %p498_p12 = scmp.lt.s32.totalorder %s700_s17, 2 }
  0x31   : > { %p37_p11 = scmp.eq.s32.totalorder %s36_s27, 0  ;;  %s177_s26 = sand.u32 1, %s688_s14  }
  0x32   : > { %s450_s4 = sshll.u32 %s177_s26, 3  ;;  %s451_s6 = sshll.u32 %s696_s16, 7 }
  0x33   : > { %s836_s5 = scalar_select %p37_p11, %s688_s14, %s39_s25  }
  0x34   : > { %s842_s9 = scalar_lea.hbm %s948_s0, %s451_s6  ;;  %s181_s21 = scalar_lea.vmem [#allocation2], %s450_s4 }
  0x35   : > { %s188_s10 = sshll.u32 %s181_s21, 4  ;;  %p848_p13 = pnand %p498_p12, %p821_p6  ;;  %s844_s10 = int_to_ptr.vmem [resolvable:$true] %s188_s10 }
  0x36   : > { %s178_s18 = scalar_lea.sflag [#allocation3], %s177_s26  ;;  %s584_s19 = scalar_lea.hbm %s842_s9, 128 }
  0x37   : > { %p585_p0 = scmp.ne.s32.totalorder %s842_s9, %s584_s19  ;;  %p586_p3 = pneg %p848_p13 }
  0x38   : > { %s589_s4 = scalar_lea.hbm %s948_s0, 256  ;;  %p590_p9 = scmp.lt.u32.totalorder %s842_s9, %s948_s0 }
  0x39   : > { %p587_p5 = pnand %p586_p3, %p585_p0  ;;  %p591_p1 = scmp.lt.u32.totalorder %s589_s4, %s584_s19 }
  0x3a   : > { %p593_p4 = scmp.lt.u32.totalorder %s584_s19, %s842_s9 }
  0x3b   : > { %p588_p7 = pneg %p587_p5  ;;  %p592_p2 = por %p591_p1, %p590_p9 }
  0x3d   : > { %p594_p6 = por %p593_p4, %p592_p2 }
  0x3f   : > { %p595_p8 = pnand %p594_p6, %p588_p7 }
  0x41   : > { %598 = shalt.err (!%p595_p8)
}
  0x42   : > { %s599_s26 = scalar_lea.vmem %s844_s10, 128  ;;  %s705_s7 = smov [#allocation2]  }
  0x43   : > { %p600_p12 = scmp.ne.s32.totalorder %s844_s10, %s599_s26  ;;  %s604_s8 = sshll.u32 %s705_s7, 4  ;;  %s605_s8 = int_to_ptr.vmem [resolvable:$false] %s604_s8 }
  0x44   : > { %s606_s21 = scalar_lea.vmem %s605_s8, 256  ;;  %p607_p5 = scmp.lt.s32.totalorder %s844_s10, %s605_s8 }
  0x45   : > { %p602_p11 = pnand %p600_p12, %p586_p3  ;;  %p608_p9 = scmp.lt.s32.totalorder %s606_s21, %s599_s26 }
  0x47   : > { %p603_p0 = pneg %p602_p11  ;;  %p609_p1 = por %p608_p9, %p607_p5 }
  0x49   : > { %p610_p2 = pnand %p609_p1, %p603_p0 }
  0x4b   : > { %613 = shalt.err (!%p610_p2)
}
  0x4c   : > { %492 = dma.hbm_to_vmem [thread:$0]  (!%p848_p13), %s842_s9, 128, %s844_s10, %s178_s18  }
  0x4d   : > { %p966_p7 = scmp.ne.s32.totalorder %s960_s24, 0 }
  0x4e   : > { %s880_s19 = sand.u32 (!%p966_p7), 1, %s684_s13   ;;  %p967_p3 = scmp.ne.s32.totalorder (!%p966_p7), %s958_s22, 0 }
  0x4f   : > { %197 = sbr.rel (%p966_p7) target bundleno = 325 (0x145), region = 32  ;;  %s453_s25 = sshll.u32 (!%p966_p7), %s880_s19, 3 }
  0x50   : > { %s200_s27 = scalar_lea.sflag (!%p966_p7), [#allocation3], %s880_s19  ;;  %s203_s4 = scalar_lea.vmem (!%p966_p7), [#allocation2], %s453_s25 }
  0x56   : > { %667 = dma.done.wait (%p967_p3), %s200_s27, 128  }
  0x57   : > { %669 = vsyncadd (%p967_p3), %s200_s27, 4294967168  ;;  %p968_p4 = scmp.ne.s32.totalorder %s956_s20, 0 }
  0x59   : > { %671 = dma.done.wait (%p968_p4), [#allocation6], 256  }
  0x5a   : > { %673 = vsyncadd (%p968_p4), [#allocation6], 4294967040  ;;  %v706_v0 = vmov 0.0|0.0   ;;  %vm707_vm0 = vmmov 0   ;;  %v708_v1 = vmov 0.0   ;;  %vm250_vm1 = vcmask 1043456  }
  0x5b   : > { %473 = vmatprep.subr.bf16.mxu0 %v706_v0  ;;  %470 = vmatprep.mubr.msk.f32.mxu0 %vm707_vm0, %v708_v1  ;;  %v236_v2 = vld [vmem:[#allocation5] sm:$0xff]  ;;  %v237_v3 = vld [vmem:[#allocation5 + $0x8] sm:$0xf]  ;;  %vm709_vm2 = vmmov 1   ;;  %v239_v5 = vld [vmem:[%s203_s4] sm:$0xff]  ;;  %vm246_vm4 = vcmask 97280  }
  0x5c   : > { %vm475_vm3 = vmpackc.low %vm250_vm1, %vm709_vm2  ;;  %v474_v4 = vpack.c.bf16 %v237_v3, %v236_v2  ;;  %v456_v6 = vld [vmem:[%s950_s2] ss:$0 sm:$0xff]  ;;  %s460_s24 = sshll.u32 %s692_s15, 7  ;;  %s232_s9 = scalar_lea.vmem [#allocation7], %s453_s25  ;;  %vm324_vm5 = vcmask 261120  }
  0x5d   : > { %s341_s10 = sshll.u32 %s232_s9, 4  ;;  %s899_s29 = scalar_lea.hbm %s951_s3, %s460_s24  ;;  %s901_s10 = int_to_ptr.vmem [resolvable:$true] %s341_s10 }
  0x5e   : > { %476 = vmatpush3.bf16.msk.msra.mxu0 %vm475_vm3, %v474_v4  ;;  %s327_s6 = scalar_lea.sflag [#allocation4], %s880_s19  ;;  %s614_s26 = scalar_lea.vmem %s901_s10, 128 }
  0x5f   : > { %p615_p13 = scmp.ne.s32.totalorder %s901_s10, %s614_s26  ;;  %s710_s15 = smov [#allocation7]  }
  0x60   : > { %s618_s7 = sshll.u32 %s710_s15, 4  ;;  %s619_s7 = int_to_ptr.vmem [resolvable:$false] %s618_s7 }
  0x61   : > { %471 = vmatmul.mubr.msk.f32.vlgmr.msra.gmra.mrb[0].mxu0 %vm246_vm4, %v239_v5  ;;  %p616_p6 = pnand %p615_p13, %p827_p10  ;;  %s620_s8 = scalar_lea.vmem %s619_s7, 256 }
  0x62   : > { %p621_p12 = scmp.lt.s32.totalorder %s901_s10, %s619_s7  ;;  %p622_p11 = scmp.lt.s32.totalorder %s620_s8, %s614_s26 }
  0x63   : > { %p617_p8 = pneg %p616_p6 }
  0x64   : > { %p623_p0 = por %p622_p11, %p621_p12 }
  0x66   : > { %p624_p5 = pnand %p623_p0, %p617_p8 }
 0x134   : > { %v320_v7 = vpop.f32.mrb[0].mxu0 }
 0x135   : > { %v321_v8 = vadd.f32 %v456_v6, %v320_v7  ;;  %v472_v9 = vpop.f32.mrb[1].mxu0 }
 0x137   : > { %325 = vst.msk [vmem:[%s232_s9] sm:$0xff] %vm324_vm5, %v321_v8 }
 0x138   : > { %627 = shalt.err (!%p624_p5)
}
 0x139   : > { %s628_s21 = scalar_lea.hbm %s899_s29, 128  ;;  %s632_s27 = scalar_lea.hbm %s951_s3, 256 }
 0x13a   : > { %p629_p9 = scmp.ne.s32.totalorder %s899_s29, %s628_s21  ;;  %p633_p7 = scmp.lt.u32.totalorder %s899_s29, %s951_s3 }
 0x13b   : > { %p634_p3 = scmp.lt.u32.totalorder %s632_s27, %s628_s21  ;;  %p636_p13 = scmp.lt.u32.totalorder %s628_s21, %s899_s29 }
 0x13c   : > { %p630_p1 = pnand %p629_p9, %p827_p10 }
 0x13d   : > { %p635_p4 = por %p634_p3, %p633_p7 }
 0x13e   : > { %p631_p2 = pneg %p630_p1 }
 0x13f   : > { %p637_p6 = por %p636_p13, %p635_p4 }
 0x141   : > { %p638_p8 = pnand %p637_p6, %p631_p2 }
 0x143   : > { %641 = shalt.err (!%p638_p8)
}
 0x144   : > { %483 = dma.vmem_to_hbm [thread:$0]  (%p827_p10), %s901_s10, 128, %s899_s29, %s327_s6  }
 0x145 PF: > { %s353_s22 = sand.u32 1, %s680_s12   ;;  %p969_p12 = scmp.ne.s32.totalorder %s959_s23, 0 }
 0x146   : > { %p970_p11 = scmp.ge.s32.totalorder %s700_s17, 2  ;;  %s354_s24 = scalar_lea.sflag [#allocation4], %s353_s22 }
 0x148   : > { %p494_p0 = pnand %p970_p11, %p969_p12 }
 0x14a   : > { %675 = dma.done.wait (!%p494_p0), %s354_s24, 128  }
 0x14b   : > { %677 = vsyncadd (!%p494_p0), %s354_s24, 4294967168  ;;  %s20_s17 = sadd.s32 1, %s700_s17   ;;  %s971_s12 = smov %s684_s13 }
 0x14c   : > { %p17_p5 = scmp.ge.s32.totalorder %s20_s17, 4   ;;  %s972_s13 = smov %s688_s14 }
 0x14d   : > { %s973_s14 = smov %s836_s5  ;;  %s974_s15 = smov %s696_s16 }
 0x14e   : > { %s975_s16 = smov %s977_s28  ;;  %19 = sbr.rel (!%p17_p5) target bundleno = 7 (0x7), region = 85 }
 0x155   :  { %359 = vsyncpa [#allocation3], 1 }
 0x156   :  { %361 = vsyncpa [#allocation3 + $0x1], 1 }
 0x157   :  { %362 = vsyncpa [#allocation6], 1 }
 0x158   :  { %363 = vsyncpa [#allocation4], 1 }
 0x159   :  { %365 = vsyncpa [#allocation4 + $0x1], 1 }

</bundles_post_ra>
